<compile_context>
chip_gen: v6e
topology: v6e:2x2x1
jax: 0.10.0
libtpu: 0.0.40
codegen_flags: <defaults>
</compile_context>

<pallas_src>
import functools

import numpy as np
import jax
import jax.numpy as jnp
from jax.experimental import pallas as pl
from jax.experimental.pallas import tpu as pltpu

_NEG = float(np.finfo(np.float32).min)


def _round_up(x, m):
    return ((x + m - 1) // m) * m


@functools.lru_cache(maxsize=None)
def _vmem_limit():
    # Generation-aware scoped VMEM limit (v7x only has 64 MiB per TensorCore).
    cap = 128 * 1024 * 1024
    try:
        cap = int(getattr(pltpu.get_tpu_info(), "vmem_capacity_bytes", cap))
    except Exception:
        pass
    return int(max(32 * 1024 * 1024, min(cap * 3 // 4, 96 * 1024 * 1024)))


@functools.lru_cache(maxsize=None)
def _single_buffer_ok():
    # Probe whether pipeline_mode=pl.Buffered(1) is supported so grid-invariant
    # weight/bias operands are single-buffered (halves their VMEM footprint).
    try:
        def k(x_ref, w_ref, o_ref):
            o_ref[...] = x_ref[...] + w_ref[...]

        x = jnp.zeros((16, 128), jnp.float32)
        w = jnp.ones((8, 128), jnp.float32)
        out = pl.pallas_call(
            k,
            out_shape=jax.ShapeDtypeStruct((16, 128), jnp.float32),
            grid=(2,),
            in_specs=[
                pl.BlockSpec((8, 128), lambda i: (i, 0)),
                pl.BlockSpec((8, 128), lambda i: (0, 0),
                             pipeline_mode=pl.Buffered(1)),
            ],
            out_specs=pl.BlockSpec((8, 128), lambda i: (i, 0)),
        )(x, w)
        jax.block_until_ready(out)
        return True
    except Exception:
        return False


def _const_spec(shape):
    """BlockSpec for a grid-invariant operand (weights / bias)."""
    zeros = (0,) * len(shape)
    idx = lambda i, _z=zeros: _z
    if _single_buffer_ok():
        return pl.BlockSpec(shape, idx, pipeline_mode=pl.Buffered(1))
    return pl.BlockSpec(shape, idx)


def _choose_tn(n):
    """Row tile: large to amortize per-step overhead, >=2 grid steps when possible."""
    if n >= 1024:
        return 512
    if n >= 16:
        return _round_up((n + 1) // 2, 8)
    return max(8, _round_up(n, 8))


# ---------------------------------------------------------------------------
# Pallas kernels
# ---------------------------------------------------------------------------
def _linear_kernel(x_ref, w_ref, b_ref, o_ref, *, relu):
    """o = act(x @ w + b); BN scale pre-folded into w/b; bf16 MXU, f32 accum."""
    x = x_ref[...].astype(w_ref.dtype)
    z = jnp.dot(x, w_ref[...], preferred_element_type=jnp.float32) + b_ref[...]
    if relu:
        z = jnp.maximum(z, 0.0)
    o_ref[...] = z


def _linear_padded(x, w, b, relu, tn):
    n_pad, cin = x.shape
    cout = w.shape[1]
    return pl.pallas_call(
        functools.partial(_linear_kernel, relu=bool(relu)),
        out_shape=jax.ShapeDtypeStruct((n_pad, cout), jnp.float32),
        grid=(n_pad // tn,),
        in_specs=[
            pl.BlockSpec((tn, cin), lambda i: (i, 0)),
            _const_spec((cin, cout)),
            _const_spec((1, cout)),
        ],
        out_specs=pl.BlockSpec((tn, cout), lambda i: (i, 0)),
        compiler_params=pltpu.CompilerParams(
            dimension_semantics=("parallel",),
            vmem_limit_bytes=_vmem_limit(),
        ),
    )(x, w, b)


def mlp_apply(x, layers):
    """Stack of fused Linear(+BN)+ReLU layers; rows padded once per stack (not per layer)."""
    n = x.shape[0]
    tn = _choose_tn(n)
    n_pad = _round_up(n, tn)
    if n_pad != n:
        x = jnp.pad(x, ((0, n_pad - n), (0, 0)))
    for w, b, relu in layers:
        if x.shape[1] != w.shape[0]:            # cin padded to >=8 lanes in the params
            x = jnp.pad(x, ((0, 0), (0, w.shape[0] - x.shape[1])))
        x = _linear_padded(x, w, b, relu, tn)
    return x[:n] if n_pad != n else x


def _conv_last_max_kernel(h_ref, w_ref, b_ref, mask_ref, o_ref):
    tm, K, cin = h_ref.shape
    cout = w_ref.shape[1]
    h = h_ref[...].reshape(tm * K, cin).astype(w_ref.dtype)
    z = jnp.dot(h, w_ref[...], preferred_element_type=jnp.float32) + b_ref[...]
    z = z.reshape(tm, K, cout)
    mask = mask_ref[...]
    z = jnp.where(mask[:, :, None] > 0.5, z, _NEG)
    m = jnp.max(z, axis=1)                                 # (tm, cout)
    has = jnp.max(mask, axis=1, keepdims=True) > 0.5
    o_ref[...] = jnp.where(has, m, 0.0)                    # empty neighborhoods -> 0


def conv_last_max(h, mask, w, b):
    """Fused last MLP layer of PointNetConv + masked max over the K neighbor slots."""
    nc, K, cin = h.shape
    cout = w.shape[1]
    w_bytes = int(np.prod(w.shape)) * w.dtype.itemsize
    budget = 24 * 1024 * 1024
    tm = 8
    for cand in (64, 32, 16, 8):
        need = cand * K * (cin + cout) * 4 * 2 + cand * cout * 4 * 2 + 2 * w_bytes
        if need <= budget:
            tm = cand
            break
    cap = _round_up(max(8, (nc + 1) // 2 if nc >= 16 else nc), 8)
    tm = min(tm, cap)
    m_pad = _round_up(nc, tm)
    if m_pad != nc:
        h = jnp.pad(h, ((0, m_pad - nc), (0, 0), (0, 0)))
        mask = jnp.pad(mask, ((0, m_pad - nc), (0, 0)))
    out = pl.pallas_call(
        _conv_last_max_kernel,
        out_shape=jax.ShapeDtypeStruct((m_pad, cout), jnp.float32),
        grid=(m_pad // tm,),
        in_specs=[
            pl.BlockSpec((tm, K, cin), lambda i: (i, 0, 0)),
            _const_spec((cin, cout)),
            _const_spec((1, cout)),
            pl.BlockSpec((tm, K), lambda i: (i, 0)),
        ],
        out_specs=pl.BlockSpec((tm, cout), lambda i: (i, 0)),
        compiler_params=pltpu.CompilerParams(
            dimension_semantics=("parallel",),
            vmem_limit_bytes=_vmem_limit(),
        ),
    )(h, w, b, mask)
    return out[:nc]


def _segment_max_kernel(gid_ref, h_ref, o_ref, *, num_graphs):
    @pl.when(pl.program_id(0) == 0)
    def _():
        o_ref[...] = jnp.full(o_ref.shape, _NEG, o_ref.dtype)

    h = h_ref[...]                       # (tn, C)
    gid = gid_ref[...]                   # (tn, 1) int32, padded rows are -1
    per_g = [jnp.max(jnp.where(gid == g, h, _NEG), axis=0, keepdims=True)
             for g in range(num_graphs)]
    upd = jnp.concatenate(per_g, axis=0)               # (num_graphs, C)
    o_ref[...] = jnp.maximum(o_ref[...], upd)


def segment_max_pool(h, batch_ids, num_graphs):
    """global_max_pool: per-graph max reading the feature matrix exactly once."""
    n, c = h.shape
    tn = _choose_tn(n)
    n_pad = _round_up(n, tn)
    gid = jnp.asarray(batch_ids, jnp.int32).reshape(n, 1)
    if n_pad != n:
        h = jnp.pad(h, ((0, n_pad - n), (0, 0)))
        gid = jnp.pad(gid, ((0, n_pad - n), (0, 0)), constant_values=-1)
    return pl.pallas_call(
        functools.partial(_segment_max_kernel, num_graphs=num_graphs),
        out_shape=jax.ShapeDtypeStruct((num_graphs, c), jnp.float32),
        grid=(n_pad // tn,),
        in_specs=[
            pl.BlockSpec((tn, 1), lambda i: (i, 0)),
            pl.BlockSpec((tn, c), lambda i: (i, 0)),
        ],
        out_specs=pl.BlockSpec((num_graphs, c), lambda i: (0, 0)),
        compiler_params=pltpu.CompilerParams(
            dimension_semantics=("arbitrary",),      # output accumulates across steps
            vmem_limit_bytes=_vmem_limit(),
        ),
    )(gid, h)


def _head_kernel(x_ref, *refs):
    # TODO(synk): dropout(p=0.5) between head layers is identity in eval mode.
    o_ref = refs[-1]
    ws = refs[:-1]
    n_layers = len(ws) // 2
    h = x_ref[...]
    for li in range(n_layers):
        w = ws[2 * li][...]
        b = ws[2 * li + 1][...]
        h = jnp.dot(h, w, preferred_element_type=jnp.float32) + b
        if li < n_layers - 1:
            h = jnp.maximum(h, 0.0)
    o_ref[...] = h


def head_apply(x, layers):
    """Whole [8,32,128,32,8,3] head MLP in one kernel; intermediates stay in VMEM."""
    n, cin = x.shape
    tn = _choose_tn(n)
    n_pad = _round_up(n, tn)
    if n_pad != n:
        x = jnp.pad(x, ((0, n_pad - n), (0, 0)))
    cout = layers[-1][0].shape[1]
    flat = []
    in_specs = [pl.BlockSpec((tn, cin), lambda i: (i, 0))]
    for w, b, _relu in layers:
        flat += [w, b]
        in_specs += [_const_spec(tuple(w.shape)), _const_spec(tuple(b.shape))]
    out = pl.pallas_call(
        _head_kernel,
        out_shape=jax.ShapeDtypeStruct((n_pad, cout), jnp.float32),
        grid=(n_pad // tn,),
        in_specs=in_specs,
        out_specs=pl.BlockSpec((tn, cout), lambda i: (i, 0)),
        compiler_params=pltpu.CompilerParams(
            dimension_semantics=("parallel",),
            vmem_limit_bytes=_vmem_limit(),
        ),
    )(x, *flat)
    return out[:n]


# ---------------------------------------------------------------------------
# Parameters (deterministic, mirroring Net.__init__ xavier_normal / zeros init).
# Eval-mode BatchNorm (running mean 0, var 1) is folded into the linear weight.
# ---------------------------------------------------------------------------
def make_mlp_params(key, channels, norm="batch_norm", w_dtype=jnp.bfloat16):
    layers = []
    n = len(channels) - 1
    keys = jax.random.split(key, 2 * n)
    for i in range(n):
        cin, cout = channels[i], channels[i + 1]
        std = float(np.sqrt(2.0 / (cin + cout)))
        w = jax.random.normal(keys[2 * i], (cin, cout), jnp.float32) * std
        b = jnp.zeros((1, cout), jnp.float32)     # biases zero-init in Net.__init__
        last = i == n - 1
        if (not last) and norm == "batch_norm":
            # Net.__init__ xavier-normals the (unsqueezed) 1-D BN weight, beta -> 0;
            # eval-mode BN (mean 0, var 1): y = gamma / sqrt(1 + eps) * x.
            g_std = float(np.sqrt(2.0 / (1 + cout)))
            gamma = jax.random.normal(keys[2 * i + 1], (1, cout), jnp.float32) * g_std
            scale = gamma / np.float32(np.sqrt(1.0 + 1e-5))
        else:
            scale = jnp.ones((1, cout), jnp.float32)
        w_f = w * scale                            # fold BN scale into the weight columns
        b_f = b * scale                            # (+ BN beta == 0)
        if cin < 8:                                # lane-friendlier tiny first layer (sa1)
            w_f = jnp.pad(w_f, ((0, 8 - cin), (0, 0)))
        layers.append((w_f.astype(w_dtype), b_f.astype(jnp.float32), not last))
    # TODO(synk): train-mode BatchNorm statistics and dropout are not implemented;
    # evaluation-mode semantics are used.
    return layers


# ---------------------------------------------------------------------------
# Host-side index construction (glue): FPS, radius search, kNN
# ---------------------------------------------------------------------------
def fps_indices(pos, batch, ratio):
    # Deterministic FPS (starts at first point of each graph, i.e. random_start=False).
    pos, batch = np.asarray(pos), np.asarray(batch)
    picked = []
    for b in np.unique(batch):
        pts = np.nonzero(batch == b)[0]
        p = pos[pts]
        m = int(np.ceil(ratio * len(pts)))
        sel = [0]
        d = np.sum((p - p[0]) ** 2, axis=1)
        for _ in range(m - 1):
            nxt = int(np.argmax(d))
            sel.append(nxt)
            d = np.minimum(d, np.sum((p - p[nxt]) ** 2, axis=1))
        picked.append(pts[np.array(sel, np.int64)])
    return np.concatenate(picked)


def radius_neighbors(pos, batch, c_pos, c_batch, r, K):
    # TODO(synk): torch_cluster.radius caps at 64 neighbors in an unspecified order;
    # we keep the first 64 candidates in index order.
    nc = c_pos.shape[0]
    nbr = np.zeros((nc, K), np.int32)
    mask = np.zeros((nc, K), np.float32)
    for i in range(nc):
        d2 = np.sum((pos - c_pos[i]) ** 2, axis=1)
        cand = np.nonzero((d2 <= r * r) & (batch == c_batch[i]))[0][:K]
        nbr[i, : len(cand)] = cand
        mask[i, : len(cand)] = 1.0
    return nbr, mask


def knn_indices(pos_src, batch_src, pos_dst, batch_dst, k):
    pos_src, batch_src = np.asarray(pos_src), np.asarray(batch_src)
    pos_dst, batch_dst = np.asarray(pos_dst), np.asarray(batch_dst)
    nd = pos_dst.shape[0]
    idx = np.zeros((nd, k), np.int32)
    for i in range(nd):
        d2 = np.sum((pos_src - pos_dst[i]) ** 2, axis=1)
        d2 = np.where(batch_src == batch_dst[i], d2, np.inf)
        idx[i] = np.argsort(d2)[:k]
    return idx


# ---------------------------------------------------------------------------
# Modules
# ---------------------------------------------------------------------------
def sa_module(x, pos, batch, ratio, r, layers, K=64):
    idx = fps_indices(pos, batch, ratio)
    pos_np, batch_np = np.asarray(pos), np.asarray(batch)
    c_pos_np, c_batch_np = pos_np[idx], batch_np[idx]
    nbr, mask = radius_neighbors(pos_np, batch_np, c_pos_np, c_batch_np, r, K)
    nbr_j = jnp.asarray(nbr)
    c_pos = jnp.asarray(c_pos_np)
    rel = pos[nbr_j] - c_pos[:, None, :]                  # (nc, K, 3)
    parts = [x[nbr_j], rel]
    cin = x.shape[1] + 3
    if cin < 8:                                           # pad sa1's 6-ch message to 8 lanes
        parts.append(jnp.zeros((nbr_j.shape[0], K, 8 - cin), jnp.float32))
    msg_in = jnp.concatenate(parts, axis=-1)
    nc, kk, cin_p = msg_in.shape
    h = mlp_apply(msg_in.reshape(nc * kk, cin_p), layers[:-1])
    h = h.reshape(nc, kk, -1)
    w_last, b_last, _ = layers[-1]                        # plain last layer, fused with max
    out = conv_last_max(h, jnp.asarray(mask), w_last, b_last)
    return out, c_pos, jnp.asarray(c_batch_np)


def global_sa_module(x, pos, batch, layers, num_graphs):
    h = mlp_apply(jnp.concatenate([x, pos], axis=1), layers)     # (N, 2048)
    pooled = segment_max_pool(h, batch, num_graphs)              # global_max_pool
    new_pos = jnp.zeros((num_graphs, 3), jnp.float32)
    new_batch = jnp.arange(num_graphs, dtype=jnp.int32)
    return pooled, new_pos, new_batch


def fp_module(x, pos, batch, x_skip, pos_skip, batch_skip, k, layers):
    idx = jnp.asarray(knn_indices(pos, batch, pos_skip, batch_skip, k))   # (Nd, k)
    diff = pos[idx] - pos_skip[:, None, :]
    d2 = jnp.sum(diff * diff, axis=-1, keepdims=True)
    w = 1.0 / jnp.maximum(d2, 1e-16)
    interp = jnp.sum(x[idx] * w, axis=1) / jnp.sum(w, axis=1)             # knn_interpolate
    h = jnp.concatenate([interp, x_skip], axis=1)
    return mlp_apply(h, layers), pos_skip, batch_skip


class PallasPointNet2:
    def __init__(self, key):
        ks = jax.random.split(key, 7)
        self.sa1 = make_mlp_params(ks[0], [3 + 3, 64, 128, 128, 256])
        self.sa2 = make_mlp_params(ks[1], [256 + 3, 512, 512, 1024])
        self.sa3 = make_mlp_params(ks[2], [1024 + 3, 512, 1024, 1024, 2048])
        self.fp3 = make_mlp_params(ks[3], [2048 + 1024, 1024, 512, 512])
        self.fp2 = make_mlp_params(ks[4], [512 + 256, 256, 128, 128])
        self.fp1 = make_mlp_params(ks[5], [128 + 3, 256, 512, 256, 256])
        # head kept in f32 (tiny weights, precision-sensitive final regression)
        self.head = make_mlp_params(ks[6], [8, 32, 128, 32, 8, 3],
                                    norm=None, w_dtype=jnp.float32)

    def __call__(self, pos, batch):
        x = pos                                   # Net.forward: x = data.pos
        sa0 = (x, pos, batch)
        sa1 = sa_module(*sa0, 0.2, 0.2, self.sa1)
        sa2 = sa_module(*sa1, 0.25, 0.4, self.sa2)
        num_graphs = int(np.asarray(batch).max()) + 1
        sa3 = global_sa_module(*sa2, self.sa3, num_graphs)
        fp3 = fp_module(*sa3, *sa2, 1, self.fp3)
        fp2 = fp_module(*fp3, *sa1, 3, self.fp2)
        xo, _, _ = fp_module(*fp2, *sa0, 3, self.fp1)      # (N, 256)
        n = xo.shape[0]
        h = head_apply(xo.reshape(n * 32, 8), self.head)   # MLP on trailing dim of (N,32,8)
        return h.reshape(n, 32, 3).transpose(0, 2, 1)      # permute(0,2,1) -> (N, 3, 32)


if __name__ == "__main__":
    key = jax.random.PRNGKey(0)
    k_pos, k_param = jax.random.split(key)
    num_graphs, pts_per_graph = 2, 64
    pos = jax.random.uniform(k_pos, (num_graphs * pts_per_graph, 3), jnp.float32)
    batch = jnp.repeat(jnp.arange(num_graphs, dtype=jnp.int32), pts_per_graph)

    net = PallasPointNet2(k_param)
    out = net(pos, batch)
    out = jax.block_until_ready(out)
    assert out.shape == (num_graphs * pts_per_graph, 3, 32), out.shape
    assert bool(jnp.all(jnp.isfinite(out)))
    print("KERNEL_OK")
</pallas_src>

<mosaic_0001>
module attributes {stable_mosaic.version = 11 : i64} {
  func.func @k(%arg0: i32, %arg1: memref<8x128xf32, #tpu.memory_space<vmem>>, %arg2: memref<8x128xf32, #tpu.memory_space<vmem>>, %arg3: memref<8x128xf32, #tpu.memory_space<vmem>>) attributes {dimension_semantics = [#tpu.dimension_semantics<arbitrary>], iteration_bounds = array<i64: 2>, scalar_prefetch = 0 : i64, scratch_operands = 0 : i64, tpu.core_type = #tpu.core_type<tc>, window_params = [{transform_indices = @transform_0, window_bounds = array<i64: 8, 128>}, {pipeline_mode = #tpu.pipeline_mode<synchronous>, transform_indices = @transform_1, window_bounds = array<i64: 8, 128>}, {transform_indices = @transform_2, window_bounds = array<i64: 8, 128>}]} {
    %c0 = arith.constant 0 : index
    %c0_0 = arith.constant 0 : index
    %0 = vector.load %arg1[%c0, %c0_0] : memref<8x128xf32, #tpu.memory_space<vmem>>, vector<8x128xf32>
    %c0_1 = arith.constant 0 : index
    %c0_2 = arith.constant 0 : index
    %1 = vector.load %arg2[%c0_1, %c0_2] : memref<8x128xf32, #tpu.memory_space<vmem>>, vector<8x128xf32>
    %2 = arith.addf %0, %1 : vector<8x128xf32>
    %c0_3 = arith.constant 0 : index
    %c0_4 = arith.constant 0 : index
    %3 = vector.load %arg3[%c0_3, %c0_4] : memref<8x128xf32, #tpu.memory_space<vmem>>, vector<8x128xf32>
    tpu.vector_store %arg3[%c0_3, %c0_4], %2 {strides = array<i32>} : memref<8x128xf32, #tpu.memory_space<vmem>>, vector<8x128xf32>,
    return
  }
  func.func @transform_0(%arg0: i32) -> (i32, i32) {
    %c0_i32 = arith.constant 0 : i32
    %c0_i32_0 = arith.constant 0 : i32
    return %arg0, %c0_i32 : i32, i32
  }
  func.func @transform_1(%arg0: i32) -> (i32, i32) {
    %c0_i32 = arith.constant 0 : i32
    %c0_i32_0 = arith.constant 0 : i32
    %c0_i32_1 = arith.constant 0 : i32
    return %c0_i32, %c0_i32_0 : i32, i32
  }
  func.func @transform_2(%arg0: i32) -> (i32, i32) {
    %c0_i32 = arith.constant 0 : i32
    %c0_i32_0 = arith.constant 0 : i32
    return %arg0, %c0_i32 : i32, i32
  }
}

module attributes {stable_mosaic.version = 11 : i64} {
  func.func @_linear_kernel(%arg0: i32, %arg1: memref<512x8xf32, #tpu.memory_space<vmem>>, %arg2: memref<8x64xbf16, #tpu.memory_space<vmem>>, %arg3: memref<1x64xf32, #tpu.memory_space<vmem>>, %arg4: memref<512x64xf32, #tpu.memory_space<vmem>>) attributes {dimension_semantics = [#tpu.dimension_semantics<parallel>], iteration_bounds = array<i64: 4>, scalar_prefetch = 0 : i64, scratch_operands = 0 : i64, tpu.core_type = #tpu.core_type<tc>, window_params = [{transform_indices = @transform_0, window_bounds = array<i64: 512, 8>}, {pipeline_mode = #tpu.pipeline_mode<synchronous>, transform_indices = @transform_1, window_bounds = array<i64: 8, 64>}, {pipeline_mode = #tpu.pipeline_mode<synchronous>, transform_indices = @transform_2, window_bounds = array<i64: 1, 64>}, {transform_indices = @transform_3, window_bounds = array<i64: 512, 64>}]} {
    %c0 = arith.constant 0 : index
    %c0_0 = arith.constant 0 : index
    %0 = vector.load %arg1[%c0, %c0_0] : memref<512x8xf32, #tpu.memory_space<vmem>>, vector<512x8xf32>
    %1 = arith.truncf %0 : vector<512x8xf32> to vector<512x8xbf16>
    %c0_1 = arith.constant 0 : index
    %c0_2 = arith.constant 0 : index
    %2 = vector.load %arg2[%c0_1, %c0_2] : memref<8x64xbf16, #tpu.memory_space<vmem>>, vector<8x64xbf16>
    %cst = arith.constant dense<0.000000e+00> : vector<512x64xf32>
    %3 = tpu.matmul %1, %2, %cst {dimension_numbers = #tpu.dot_dimension_numbers<[1], [0], [0], [1], [0, 0, 1, 1], [], []>} : vector<512x8xbf16>, vector<8x64xbf16>, vector<512x64xf32> -> vector<512x64xf32>
    %c0_3 = arith.constant 0 : index
    %c0_4 = arith.constant 0 : index
    %4 = vector.load %arg3[%c0_3, %c0_4] : memref<1x64xf32, #tpu.memory_space<vmem>>, vector<1x64xf32>
    %5 = vector.broadcast %4 : vector<1x64xf32> to vector<512x64xf32>
    %6 = arith.addf %3, %5 : vector<512x64xf32>
    %cst_5 = arith.constant 0.000000e+00 : f32
    %7 = vector.broadcast %cst_5 : f32 to vector<512x64xf32>
    %8 = arith.maximumf %6, %7 : vector<512x64xf32>
    %c0_6 = arith.constant 0 : index
    %c0_7 = arith.constant 0 : index
    %9 = vector.load %arg4[%c0_6, %c0_7] : memref<512x64xf32, #tpu.memory_space<vmem>>, vector<512x64xf32>
    tpu.vector_store %arg4[%c0_6, %c0_7], %8 {strides = array<i32>} : memref<512x64xf32, #tpu.memory_space<vmem>>, vector<512x64xf32>,
    return
  }
  func.func @transform_0(%arg0: i32) -> (i32, i32) {
    %c0_i32 = arith.constant 0 : i32
    %c0_i32_0 = arith.constant 0 : i32
    return %arg0, %c0_i32 : i32, i32
  }
  func.func @transform_1(%arg0: i32) -> (i32, i32) {
    %c0_i32 = arith.constant 0 : i32
    %c0_i32_0 = arith.constant 0 : i32
    %c0_i32_1 = arith.constant 0 : i32
    return %c0_i32, %c0_i32_0 : i32, i32
  }
  func.func @transform_2(%arg0: i32) -> (i32, i32) {
    %c0_i32 = arith.constant 0 : i32
    %c0_i32_0 = arith.constant 0 : i32
    %c0_i32_1 = arith.constant 0 : i32
    return %c0_i32, %c0_i32_0 : i32, i32
  }
  func.func @transform_3(%arg0: i32) -> (i32, i32) {
    %c0_i32 = arith.constant 0 : i32
    %c0_i32_0 = arith.constant 0 : i32
    return %arg0, %c0_i32 : i32, i32
  }
}

</mosaic_0001>

<bundles_post_ra>
// kernel: tpu_custom_call.1
= control target key start
LH: loop header
LB: loop body
LE: loop exit
PB: predicated region body
PF: predicated region fallthrough
CT: control target
= control target key end

     0   :  { %7 = vsyncpa [#allocation3], 0  ;;  %s649_s0 = inlined_call_operand.hbm [shape: f32[16,128], index: 0, kind: input, shape index: {}]   ;;  %s650_s1 = inlined_call_operand.hbm [shape: f32[8,128], index: 1, kind: input, shape index: {}]   ;;  %s651_s2 = inlined_call_operand.hbm [shape: f32[16,128], index: 2, kind: output, shape index: {}]  }
   0x1   :  { %9 = vsyncpa [#allocation3 + $0x1], 0 }
   0x2   :  { %10 = vsyncpa [#allocation6], 0 }
   0x3   :  { %11 = vsyncpa [#allocation4], 0 }
   0x4   :  { %13 = vsyncpa [#allocation4 + $0x1], 0  ;;  %s483_s9 = smov 0   ;;  %s485_s10 = smov 0  }
   0x5   :  { %s487_s11 = smov 0   ;;  %s489_s12 = smov 0  }
   0x6 LB: > { %s504_s13 = sadd.s32 4294967295, %s463_s12   ;;  %s270_s14 = sadd.s32 4294967294, %s463_s12   ;;  %s463_s12 = sphi %s489_s12, %s674_s12   ;;  %s459_s11 = sphi %s487_s11, %s673_s11   ;;  %s455_s10 = sphi %s485_s10, %s672_s10   ;;  %s451_s9 = sphi %s483_s9, %s671_s9  }
   0x7   : > { %p39_p0 = scmp.ne.s32.totalorder %s455_s10, %s451_s9  ;;  %p652_p1 = scmp.eq.s32.totalorder %s504_s13, 0 }
   0x8   : > { %p90_p3 = scmp.eq.s32.totalorder %s270_s14, 1  ;;  %p271_p5 = scmp.ge.s32.totalorder %s463_s12, 1 }
   0x9   : > { %p513_p4 = por %p652_p1, %p39_p0  ;;  %p97_p7 = scmp.lt.s32.totalorder %s463_s12, 3 }
   0xa   : > { %p518_p6 = por %p90_p3, %p39_p0  ;;  %s465_s18 = smov [#allocation5]  }
   0xb   : > { %s656_s15 = scalar_select %p513_p4, 1, 0 }
   0xc   : > { %s657_s16 = scalar_select %p518_p6, 1, 0 }
   0xd   : > { %p523_p8 = pnand %p271_p5, %p97_p7  ;;  %s110_s19 = sshll.u32 %s465_s18, 4  ;;  %s111_s19 = int_to_ptr.vmem [resolvable:$true] %s110_s19 }
   0xe   : > { %s531_s20 = sadd.s32 1, %s463_s12   ;;  %s26_s24 = sadd.s32 1, %s459_s11 }
   0xf   : > { %s658_s17 = scalar_select %p523_p8, 1, 0 }
  0x10   : > { %p292_p10 = pneg %p523_p8  ;;  %s23_s22 = ssub.s32 %s463_s12, %s531_s20 }
  0x11   : > { %p541_p12 = scmp.eq.s32.totalorder %s23_s22, 0  ;;  %p33_p13 = scmp.ne.s32.totalorder %s459_s11, %s455_s10 }
  0x12   : > { %p535_p11 = pnand %p292_p10, %p652_p1  ;;  %s352_s25 = scalar_lea.vmem %s111_s19, 128 }
  0x13   : > { %p353_p3 = scmp.ne.s32.totalorder %s111_s19, %s352_s25  ;;  %p360_p9 = scmp.lt.s32.totalorder %s111_s19, %s111_s19 }
  0x14   : > { %p343_p0 = pneg %p535_p11  ;;  %p361_p2 = scmp.lt.s32.totalorder %s352_s25, %s352_s25 }
  0x16   : > { %p355_p5 = pnand %p353_p3, %p343_p0  ;;  %p362_p10 = por %p361_p2, %p360_p9 }
  0x18   : > { %p356_p7 = pneg %p355_p5 }
  0x1a   : > { %p363_p1 = pnand %p362_p10, %p356_p7 }
  0x1c   : > { %366 = shalt.err (!%p363_p1)
}
  0x1d   : > { %295 = dma.hbm_to_vmem [thread:$0]  (!%p535_p11), %s650_s1, 128, %s111_s19, [#allocation6]  }
  0x1e   : > { %s558_s28 = scalar_select %p541_p12, %s459_s11, %s26_s24  }
  0x1f   : > { %p34_p1 = scmp.eq.s32.totalorder %s463_s12, 0  ;;  %p661_p2 = scmp.eq.s32.totalorder %s504_s13, 1 }
  0x20   : > { %p305_p0 = scmp.lt.s32.totalorder %s463_s12, 2  ;;  %s121_s30 = sand.u32 1, %s459_s11  }
  0x21   : > { %p566_p9 = por %p661_p2, %p33_p13  ;;  %p35_p3 = por %p34_p1, %p33_p13 }
  0x22   : > { %s274_s3 = sshll.u32 %s121_s30, 3  ;;  %s275_s4 = sshll.u32 %s463_s12, 7 }
  0x23   : > { %s662_s29 = scalar_select %p566_p9, 1, 0 }
  0x24   : > { %s579_s7 = scalar_lea.hbm %s649_s0, %s275_s4  ;;  %s125_s8 = scalar_lea.vmem [#allocation2], %s274_s3 }
  0x25   : > { %s132_s14 = sshll.u32 %s125_s8, 4  ;;  %p581_p11 = pnand %p305_p0, %p35_p3  ;;  %s133_s14 = int_to_ptr.vmem [resolvable:$true] %s132_s14 }
  0x26   : > { %s122_s19 = scalar_lea.sflag [#allocation3], %s121_s30  ;;  %s367_s21 = scalar_lea.hbm %s579_s7, 128 }
  0x27   : > { %p368_p12 = scmp.ne.s32.totalorder %s579_s7, %s367_s21  ;;  %p369_p13 = pneg %p581_p11 }
  0x28   : > { %s372_s24 = scalar_lea.hbm %s649_s0, 256  ;;  %p373_p10 = scmp.lt.s32.totalorder %s579_s7, %s649_s0 }
  0x29   : > { %p370_p5 = pnand %p369_p13, %p368_p12  ;;  %p374_p1 = scmp.lt.s32.totalorder %s372_s24, %s367_s21 }
  0x2b   : > { %p371_p7 = pneg %p370_p5  ;;  %p375_p2 = por %p374_p1, %p373_p10 }
  0x2d   : > { %p376_p0 = pnand %p375_p2, %p371_p7 }
  0x2f   : > { %379 = shalt.err (!%p376_p0)
}
  0x30   : > { %s380_s27 = scalar_lea.vmem %s133_s14, 128  ;;  %s466_s30 = smov [#allocation2]  }
  0x31   : > { %p381_p3 = scmp.ne.s32.totalorder %s133_s14, %s380_s27  ;;  %s385_s3 = sshll.u32 %s466_s30, 4  ;;  %s386_s3 = int_to_ptr.vmem [resolvable:$false] %s385_s3 }
  0x32   : > { %s387_s4 = scalar_lea.vmem %s386_s3, 256  ;;  %p388_p12 = scmp.lt.s32.totalorder %s133_s14, %s386_s3 }
  0x33   : > { %p383_p6 = pnand %p381_p3, %p369_p13  ;;  %p389_p5 = scmp.lt.s32.totalorder %s387_s4, %s380_s27 }
  0x35   : > { %p384_p9 = pneg %p383_p6  ;;  %p390_p4 = por %p389_p5, %p388_p12 }
  0x37   : > { %p391_p8 = pnand %p390_p4, %p384_p9 }
  0x39   : > { %394 = shalt.err (!%p391_p8)
}
  0x3a   : > { %299 = dma.hbm_to_vmem [thread:$0]  (!%p581_p11), %s579_s7, 128, %s133_s14, %s122_s19  }
  0x3b   : > { %p664_p7 = scmp.ne.s32.totalorder %s658_s17, 0 }
  0x3c   : > { %s602_s5 = sand.u32 (!%p664_p7), 1, %s455_s10   ;;  %p665_p6 = scmp.ne.s32.totalorder (!%p664_p7), %s656_s15, 0 }
  0x3d   : > { %141 = sbr.rel (%p664_p7) target bundleno = 95 (0x5f), region = 28  ;;  %s277_s6 = sshll.u32 (!%p664_p7), %s602_s5, 3 }
  0x3e   : > { %s144_s8 = scalar_lea.sflag (!%p664_p7), [#allocation3], %s602_s5  ;;  %s147_s21 = scalar_lea.vmem (!%p664_p7), [#allocation2], %s277_s6 }
  0x42   : > { %438 = dma.done.wait (%p665_p6), %s144_s8, 128  }
  0x43   : > { %440 = vsyncadd (%p665_p6), %s144_s8, 4294967168  ;;  %p666_p4 = scmp.eq.s32.totalorder %s504_s13, 0 }
  0x45   : > { %442 = dma.done.wait (%p666_p4), [#allocation6], 128   ;;  %p667_p8 = pmov %p666_p4 }
  0x46   : > { %s171_s17 = scalar_lea.vmem [#allocation7], %s277_s6  ;;  %s281_s14 = sshll.u32 %s504_s13, 7  ;;  %v172_v0 = vld [vmem:[%s147_s21] sm:$0xff]  ;;  %v173_v1 = vld [vmem:[#allocation5] sm:$0xff] }
  0x47   : > { %444 = vsyncadd (%p667_p8), [#allocation6], 4294967168  ;;  %s190_s7 = sshll.u32 %s171_s17, 4  ;;  %v174_v2 = vadd.f32 %v173_v1, %v172_v0  ;;  %s188_s15 = scalar_lea.hbm %s651_s2, %s281_s14  ;;  %s191_s7 = int_to_ptr.vmem [resolvable:$true] %s190_s7 }
  0x48   : > { %s177_s22 = scalar_lea.sflag [#allocation4], %s602_s5  ;;  %s395_s23 = scalar_lea.vmem %s191_s7, 128 }
  0x49   : > { %175 = vst [vmem:[%s171_s17] sm:$0xff] %v174_v2  ;;  %p396_p9 = scmp.ne.s32.totalorder %s191_s7, %s395_s23  ;;  %p668_p11 = scmp.ne.s32.totalorder %s662_s29, 0 }
  0x4a   : > { %s467_s24 = smov [#allocation7]  }
  0x4b   : > { %p397_p13 = pnand %p396_p9, %p668_p11  ;;  %s399_s25 = sshll.u32 %s467_s24, 4  ;;  %s400_s25 = int_to_ptr.vmem [resolvable:$false] %s399_s25 }
  0x4c   : > { %s401_s26 = scalar_lea.vmem %s400_s25, 256  ;;  %p402_p1 = scmp.lt.s32.totalorder %s191_s7, %s400_s25 }
  0x4d   : > { %p398_p10 = pneg %p397_p13  ;;  %p403_p2 = scmp.lt.s32.totalorder %s401_s26, %s395_s23 }
  0x4f   : > { %p404_p0 = por %p403_p2, %p402_p1 }
  0x51   : > { %p405_p3 = pnand %p404_p0, %p398_p10 }
  0x53   : > { %408 = shalt.err (!%p405_p3)
}
  0x54   : > { %s409_s13 = scalar_lea.hbm %s188_s15, 128  ;;  %s413_s3 = scalar_lea.hbm %s651_s2, 256 }
  0x55   : > { %p410_p12 = scmp.ne.s32.totalorder %s188_s15, %s409_s13  ;;  %p414_p6 = scmp.lt.s32.totalorder %s188_s15, %s651_s2 }
  0x56   : > { %p415_p4 = scmp.lt.s32.totalorder %s413_s3, %s409_s13 }
  0x57   : > { %p411_p5 = pnand %p410_p12, %p668_p11 }
  0x58   : > { %p416_p8 = por %p415_p4, %p414_p6 }
  0x59   : > { %p412_p7 = pneg %p411_p5 }
  0x5b   : > { %p417_p9 = pnand %p416_p8, %p412_p7 }
  0x5d   : > { %420 = shalt.err (!%p417_p9)
}
  0x5e   : > { %290 = dma.vmem_to_hbm [thread:$0]  (%p668_p11), %s191_s7, 128, %s188_s15, %s177_s22  }
  0x5f PF: > { %s202_s6 = sand.u32 1, %s451_s9   ;;  %p669_p13 = scmp.ne.s32.totalorder %s657_s16, 0 }
  0x60   : > { %p670_p10 = scmp.ge.s32.totalorder %s463_s12, 2  ;;  %s203_s8 = scalar_lea.sflag [#allocation4], %s202_s6 }
  0x62   : > { %p301_p1 = pnand %p670_p10, %p669_p13 }
  0x64   : > { %p302_p2 = pneg %p301_p1 }
  0x66   : > { %446 = dma.done.wait (%p302_p2), %s203_s8, 128  }
  0x67   : > { %448 = vsyncadd (%p302_p2), %s203_s8, 4294967168  ;;  %p16_p0 = scmp.ge.s32.totalorder %s531_s20, 4   ;;  %s671_s9 = smov %s455_s10 }
  0x68   : > { %s672_s10 = smov %s459_s11  ;;  %s673_s11 = smov %s558_s28 }
  0x69   : > { %s674_s12 = smov %s531_s20  ;;  %18 = sbr.rel (!%p16_p0) target bundleno = 6 (0x6), region = 77 }
  0x6e   :  { %208 = vsyncpa [#allocation3], 1 }
  0x6f   :  { %210 = vsyncpa [#allocation3 + $0x1], 1 }
  0x70   :  { %211 = vsyncpa [#allocation6], 1 }
  0x71   :  { %212 = vsyncpa [#allocation4], 1 }
  0x72   :  { %214 = vsyncpa [#allocation4 + $0x1], 1 }

// kernel: tpu_custom_call.1
= control target key start
LH: loop header
LB: loop body
LE: loop exit
PB: predicated region body
PF: predicated region fallthrough
CT: control target
= control target key end

     0   :  { %s1037_s12 = smov 0   ;;  %s1361_s0 = inlined_call_operand.vmem [shape: f32[2048,8], index: 0, kind: input, shape index: {}]   ;;  %s1362_s1 = inlined_call_operand.vmem [shape: bf16[8,64], index: 1, kind: input, shape index: {}]   ;;  %s1363_s2 = inlined_call_operand.vmem [shape: f32[1,64], index: 2, kind: input, shape index: {}]   ;;  %s1364_s3 = inlined_call_operand.vmem [shape: f32[2048,64], index: 3, kind: output, shape index: {}]  }
   0x1 LB: > { %s854_s13 = sadd.s32 4294967295, %s1015_s12   ;;  %p858_p0 = scmp.ge.s32.totalorder %s1015_s12, 1  ;;  %s1015_s12 = sphi %s1037_s12, %s13_s12  }
   0x2   : > { %p138_p1 = scmp.lt.s32.totalorder %s1015_s12, 5 }
   0x4   : > { %p139_p2 = pnand %p858_p0, %p138_p1 }
   0x5   : > { %s859_s16 = sshll.u32 (!%p139_p2), %s854_s13, 6 }
   0x6   : > { %142 = sbr.rel (%p139_p2) target bundleno = 279 (0x117), region = 32  ;;  %p163_p3 = scmp.lt.s32.totalorder (!%p139_p2), %s859_s16, 255 }
   0xb   : > { %v271_v0 = vld [vmem:[%s1362_s1] sm:$0xf]  ;;  %vm376_vm0 = vcmask 1043456   ;;  %s1366_s16 = smov (!%p163_p3, %s859_s16), 255  ;;  %vm279_vm1 = vcmask 64512   ;;  %vm733_vm2 = vcmask 523264  }
   0xc   : > { %999 = vmatprep.subr.msk.bf16.mxu0 %vm376_vm0, %v271_v0  ;;  %1000 = vmatprep.subr.msk.bf16.mxu1 %vm376_vm0, %v271_v0  ;;  %v378_v1 = vsel %vm376_vm0, %v271_v0, 0  ;;  %s860_s17 = sshll.u32 %s1366_s16, 3 }
   0xd   : > { %932 = vmatpush3.bf16.msra.mxu0 %v378_v1  ;;  %998 = vmatpush3.bf16.msra.mxu1 %v378_v1  ;;  %s1056_s20 = scalar_lea.vmem %s1361_s0, %s860_s17  ;;  %s1165_s25 = scalar_lea.vmem %s1364_s3, %s860_s17 }
   0xe   : > { %v175_v2 = vld [vmem:[%s1056_s20] sm:$0xff]  ;;  %v176_v3 = vld [vmem:[%s1056_s20 + $0x8] sm:$0xff]  ;;  %v177_v7 = vld [vmem:[%s1056_s20 + $0x10] sm:$0xff] }
   0xf   : > { %v207_v4 = vld [vmem:[%s1056_s20 + $0x100] sm:$0xff]  ;;  %v239_v5 = vpack.c.bf16 %v176_v3, %v175_v2  ;;  %v208_v6 = vld [vmem:[%s1056_s20 + $0x108] sm:$0xff]  ;;  %v178_v8 = vld [vmem:[%s1056_s20 + $0x18] sm:$0xff] }
  0x10   : > { %v255_v9 = vpack.c.bf16 %v208_v6, %v207_v4  ;;  %v240_v10 = vpack.c.bf16 %v178_v8, %v177_v7  ;;  %v209_v11 = vld [vmem:[%s1056_s20 + $0x110] sm:$0xff]  ;;  %v210_v12 = vld [vmem:[%s1056_s20 + $0x118] sm:$0xff]  ;;  %v179_v13 = vld [vmem:[%s1056_s20 + $0x20] sm:$0xff] }
  0x11   : > { %933 = vmatprep.mubr.msk.bf16.mxu0 %vm279_vm1, %v239_v5  ;;  %v256_v14 = vpack.c.bf16 %v210_v12, %v209_v11  ;;  %v180_v15 = vld [vmem:[%s1056_s20 + $0x28] sm:$0xff]  ;;  %v211_v16 = vld [vmem:[%s1056_s20 + $0x120] sm:$0xff]  ;;  %v181_v20 = vld [vmem:[%s1056_s20 + $0x30] sm:$0xff] }
  0x12   : > { %v212_v17 = vld [vmem:[%s1056_s20 + $0x128] sm:$0xff]  ;;  %965 = vmatprep.mubr.msk.bf16.mxu1 %vm279_vm1, %v255_v9  ;;  %934 = vmatmul.mubr.msk.bf16.vlgmr.msra.gmra.mxu0 %vm279_vm1, %v240_v10  ;;  %v241_v18 = vpack.c.bf16 %v180_v15, %v179_v13  ;;  %v182_v21 = vld [vmem:[%s1056_s20 + $0x38] sm:$0xff]  ;;  %v213_v22 = vld [vmem:[%s1056_s20 + $0x130] sm:$0xff] }
  0x13   : > { %v257_v19 = vpack.c.bf16 %v212_v17, %v211_v16  ;;  %966 = vmatmul.mubr.msk.bf16.vlgmr.msra.gmra.mxu1 %vm279_vm1, %v256_v14  ;;  %v214_v23 = vld [vmem:[%s1056_s20 + $0x138] sm:$0xff]  ;;  %v183_v24 = vld [vmem:[%s1056_s20 + $0x40] sm:$0xff]  ;;  %v184_v25 = vld [vmem:[%s1056_s20 + $0x48] sm:$0xff]  ;;  %v242_v28 = vpack.c.bf16 %v182_v21, %v181_v20 }
  0x14   : > { %937 = vmatprep.mubr.msk.bf16.mxu0 %vm279_vm1, %v241_v18  ;;  %v215_v26 = vld [vmem:[%s1056_s20 + $0x140] sm:$0xff]  ;;  %v216_v27 = vld [vmem:[%s1056_s20 + $0x148] sm:$0xff]  ;;  %v258_v29 = vpack.c.bf16 %v214_v23, %v213_v22  ;;  %v243_v30 = vpack.c.bf16 %v184_v25, %v183_v24  ;;  %v185_v32 = vld [vmem:[%s1056_s20 + $0x50] sm:$0xff] }
  0x15   : > { %969 = vmatprep.mubr.msk.bf16.mxu1 %vm279_vm1, %v257_v19  ;;  %v259_v31 = vpack.c.bf16 %v216_v27, %v215_v26  ;;  %v186_v33 = vld [vmem:[%s1056_s20 + $0x58] sm:$0xff]  ;;  %v217_v34 = vld [vmem:[%s1056_s20 + $0x150] sm:$0xff]  ;;  %v187_v36 = vld [vmem:[%s1056_s20 + $0x60] sm:$0xff] }
  0x16   : > { %v218_v35 = vld [vmem:[%s1056_s20 + $0x158] sm:$0xff]  ;;  %v188_v37 = vld [vmem:[%s1056_s20 + $0x68] sm:$0xff]  ;;  %v219_v38 = vld [vmem:[%s1056_s20 + $0x160] sm:$0xff]  ;;  %v244_v40 = vpack.c.bf16 %v186_v33, %v185_v32 }
  0x17   : > { %v220_v39 = vld [vmem:[%s1056_s20 + $0x168] sm:$0xff]  ;;  %v260_v41 = vpack.c.bf16 %v218_v35, %v217_v34  ;;  %v245_v42 = vpack.c.bf16 %v188_v37, %v187_v36  ;;  %v189_v44 = vld [vmem:[%s1056_s20 + $0x70] sm:$0xff]  ;;  %v190_v45 = vld [vmem:[%s1056_s20 + $0x78] sm:$0xff] }
  0x18   : > { %v261_v43 = vpack.c.bf16 %v220_v39, %v219_v38  ;;  %v221_v46 = vld [vmem:[%s1056_s20 + $0x170] sm:$0xff]  ;;  %v222_v47 = vld [vmem:[%s1056_s20 + $0x178] sm:$0xff]  ;;  %v191_v48 = vld [vmem:[%s1056_s20 + $0x80] sm:$0xff]  ;;  %v246_v52 = vpack.c.bf16 %v190_v45, %v189_v44 }
  0x19   : > { %v192_v49 = vld [vmem:[%s1056_s20 + $0x88] sm:$0xff]  ;;  %v223_v50 = vld [vmem:[%s1056_s20 + $0x180] sm:$0xff]  ;;  %v262_v53 = vpack.c.bf16 %v222_v47, %v221_v46  ;;  %v193_v56 = vld [vmem:[%s1056_s20 + $0x90] sm:$0xff] }
  0x1a   : > { %938 = vmatmul.mubr.msk.bf16.gmra.mxu0 %vm279_vm1, %v242_v28  ;;  %v224_v51 = vld [vmem:[%s1056_s20 + $0x188] sm:$0xff]  ;;  %v247_v54 = vpack.c.bf16 %v192_v49, %v191_v48  ;;  %v194_v57 = vld [vmem:[%s1056_s20 + $0x98] sm:$0xff]  ;;  %v225_v58 = vld [vmem:[%s1056_s20 + $0x190] sm:$0xff] }
  0x1b   : > { %970 = vmatmul.mubr.msk.bf16.gmra.mxu1 %vm279_vm1, %v258_v29  ;;  %941 = vmatprep.mubr.msk.bf16.mxu0 %vm279_vm1, %v243_v30  ;;  %v263_v55 = vpack.c.bf16 %v224_v51, %v223_v50  ;;  %v226_v59 = vld [vmem:[%s1056_s20 + $0x198] sm:$0xff]  ;;  %v195_v60 = vld [vmem:[%s1056_s20 + $0xa0] sm:$0xff]  ;;  %v196_v61 = vld [vmem:[%s1056_s20 + $0xa8] sm:$0xff]  ;;  %v248_v0 = vpack.c.bf16 %v194_v57, %v193_v56 }
  0x1c   : > { %973 = vmatprep.mubr.msk.bf16.mxu1 %vm279_vm1, %v259_v31  ;;  %v227_v62 = vld [vmem:[%s1056_s20 + $0x1a0] sm:$0xff]  ;;  %v228_v63 = vld [vmem:[%s1056_s20 + $0x1a8] sm:$0xff]  ;;  %v264_v1 = vpack.c.bf16 %v226_v59, %v225_v58  ;;  %v249_v2 = vpack.c.bf16 %v196_v61, %v195_v60  ;;  %v197_v4 = vld [vmem:[%s1056_s20 + $0xb0] sm:$0xff] }
  0x1d   : > { %v265_v3 = vpack.c.bf16 %v228_v63, %v227_v62  ;;  %v198_v5 = vld [vmem:[%s1056_s20 + $0xb8] sm:$0xff]  ;;  %v229_v6 = vld [vmem:[%s1056_s20 + $0x1b0] sm:$0xff]  ;;  %v199_v8 = vld [vmem:[%s1056_s20 + $0xc0] sm:$0xff] }
  0x1e   : > { %v230_v7 = vld [vmem:[%s1056_s20 + $0x1b8] sm:$0xff]  ;;  %v200_v9 = vld [vmem:[%s1056_s20 + $0xc8] sm:$0xff]  ;;  %v231_v10 = vld [vmem:[%s1056_s20 + $0x1c0] sm:$0xff]  ;;  %v250_v12 = vpack.c.bf16 %v198_v5, %v197_v4 }
  0x1f   : > { %v232_v11 = vld [vmem:[%s1056_s20 + $0x1c8] sm:$0xff]  ;;  %v266_v13 = vpack.c.bf16 %v230_v7, %v229_v6  ;;  %v251_v14 = vpack.c.bf16 %v200_v9, %v199_v8  ;;  %v201_v16 = vld [vmem:[%s1056_s20 + $0xd0] sm:$0xff]  ;;  %v202_v17 = vld [vmem:[%s1056_s20 + $0xd8] sm:$0xff] }
  0x20   : > { %v267_v15 = vpack.c.bf16 %v232_v11, %v231_v10  ;;  %v233_v18 = vld [vmem:[%s1056_s20 + $0x1d0] sm:$0xff]  ;;  %v234_v19 = vld [vmem:[%s1056_s20 + $0x1d8] sm:$0xff]  ;;  %v203_v20 = vld [vmem:[%s1056_s20 + $0xe0] sm:$0xff]  ;;  %v252_v24 = vpack.c.bf16 %v202_v17, %v201_v16 }
  0x21   : > { %v204_v21 = vld [vmem:[%s1056_s20 + $0xe8] sm:$0xff]  ;;  %v235_v22 = vld [vmem:[%s1056_s20 + $0x1e0] sm:$0xff]  ;;  %v268_v25 = vpack.c.bf16 %v234_v19, %v233_v18  ;;  %v205_v28 = vld [vmem:[%s1056_s20 + $0xf0] sm:$0xff] }
  0x22   : > { %942 = vmatmul.mubr.msk.bf16.gmra.mxu0 %vm279_vm1, %v244_v40  ;;  %v236_v23 = vld [vmem:[%s1056_s20 + $0x1e8] sm:$0xff]  ;;  %v253_v26 = vpack.c.bf16 %v204_v21, %v203_v20  ;;  %v206_v29 = vld [vmem:[%s1056_s20 + $0xf8] sm:$0xff]  ;;  %v237_v30 = vld [vmem:[%s1056_s20 + $0x1f0] sm:$0xff] }
  0x23   : > { %974 = vmatmul.mubr.msk.bf16.gmra.mxu1 %vm279_vm1, %v260_v41  ;;  %945 = vmatprep.mubr.msk.bf16.mxu0 %vm279_vm1, %v245_v42  ;;  %v269_v27 = vpack.c.bf16 %v236_v23, %v235_v22  ;;  %v238_v31 = vld [vmem:[%s1056_s20 + $0x1f8] sm:$0xff]  ;;  %v254_v32 = vpack.c.bf16 %v206_v29, %v205_v28  ;;  %v1157_v34 = vld [vmem:[%s1363_s2] ss:$0 sm:$0xff] }
  0x24   : > { %977 = vmatprep.mubr.msk.bf16.mxu1 %vm279_vm1, %v261_v43  ;;  %v270_v33 = vpack.c.bf16 %v238_v31, %v237_v30 }
  0x2a   : > { %946 = vmatmul.mubr.msk.bf16.gmra.mxu0 %vm279_vm1, %v246_v52 }
  0x2b   : > { %978 = vmatmul.mubr.msk.bf16.gmra.mxu1 %vm279_vm1, %v262_v53  ;;  %949 = vmatprep.mubr.msk.bf16.mxu0 %vm279_vm1, %v247_v54 }
  0x2c   : > { %981 = vmatprep.mubr.msk.bf16.mxu1 %vm279_vm1, %v263_v55 }
  0x32   : > { %950 = vmatmul.mubr.msk.bf16.gmra.mxu0 %vm279_vm1, %v248_v0 }
  0x33   : > { %982 = vmatmul.mubr.msk.bf16.gmra.mxu1 %vm279_vm1, %v264_v1  ;;  %953 = vmatprep.mubr.msk.bf16.mxu0 %vm279_vm1, %v249_v2 }
  0x34   : > { %985 = vmatprep.mubr.msk.bf16.mxu1 %vm279_vm1, %v265_v3 }
  0x3a   : > { %954 = vmatmul.mubr.msk.bf16.gmra.mxu0 %vm279_vm1, %v250_v12 }
  0x3b   : > { %986 = vmatmul.mubr.msk.bf16.gmra.mxu1 %vm279_vm1, %v266_v13  ;;  %957 = vmatprep.mubr.msk.bf16.mxu0 %vm279_vm1, %v251_v14 }
  0x3c   : > { %989 = vmatprep.mubr.msk.bf16.mxu1 %vm279_vm1, %v267_v15 }
  0x42   : > { %958 = vmatmul.mubr.msk.bf16.gmra.mxu0 %vm279_vm1, %v252_v24 }
  0x43   : > { %990 = vmatmul.mubr.msk.bf16.gmra.mxu1 %vm279_vm1, %v268_v25  ;;  %961 = vmatprep.mubr.msk.bf16.mxu0 %vm279_vm1, %v253_v26 }
  0x44   : > { %993 = vmatprep.mubr.msk.bf16.mxu1 %vm279_vm1, %v269_v27 }
  0x4a   : > { %962 = vmatmul.mubr.msk.bf16.gmra.mxu0 %vm279_vm1, %v254_v32 }
  0x4b   : > { %994 = vmatmul.mubr.msk.bf16.gmra.mxu1 %vm279_vm1, %v270_v33 }
  0xd2   : > { %v935_v35 = vpop.f32.mrf.mxu0 }
  0xd3   : > { %v423_v36 = vadd.f32 %v935_v35, %v1157_v34  ;;  %v967_v37 = vpop.f32.mrf.mxu1 }
  0xd4   : > { %v551_v38 = vadd.f32 %v967_v37, %v1157_v34  ;;  %v414_v39 = vpop.f32.mrf.mxu0 }
  0xd5   : > { %v671_v40 = vmax.f32 %v423_v36, 0.0  ;;  %v415_v41 = vadd.f32 %v1157_v34, %v414_v39  ;;  %v542_v42 = vpop.f32.mrf.mxu1 }
  0xd6   : > { %v703_v43 = vmax.f32 %v551_v38, 0.0  ;;  %v543_v44 = vadd.f32 %v1157_v34, %v542_v42  ;;  %v936_v45 = vpop.f32.mrf.mxu0 }
  0xd7   : > { %736 = vst.msk [vmem:[%s1165_s25 + $0x10] sm:$0xff] %vm733_vm2, %v671_v40  ;;  %v669_v46 = vmax.f32 %v415_v41, 0.0  ;;  %v426_v47 = vadd.f32 %v936_v45, %v1157_v34  ;;  %v968_v48 = vpop.f32.mrf.mxu1 }
  0xd8   : > { %768 = vst.msk [vmem:[%s1165_s25 + $0x110] sm:$0xff] %vm733_vm2, %v703_v43  ;;  %v701_v49 = vmax.f32 %v543_v44, 0.0  ;;  %v554_v50 = vadd.f32 %v968_v48, %v1157_v34  ;;  %v417_v51 = vpop.f32.mrf.mxu0 }
  0xd9   : > { %734 = vst.msk [vmem:[%s1165_s25] sm:$0xff] %vm733_vm2, %v669_v46  ;;  %v672_v52 = vmax.f32 %v426_v47, 0.0  ;;  %v418_v53 = vadd.f32 %v1157_v34, %v417_v51  ;;  %v545_v54 = vpop.f32.mrf.mxu1 }
  0xda   : > { %766 = vst.msk [vmem:[%s1165_s25 + $0x100] sm:$0xff] %vm733_vm2, %v701_v49  ;;  %v704_v55 = vmax.f32 %v554_v50, 0.0  ;;  %v546_v56 = vadd.f32 %v1157_v34, %v545_v54  ;;  %v939_v57 = vpop.f32.mrf.mxu0 }
  0xdb   : > { %737 = vst.msk [vmem:[%s1165_s25 + $0x18] sm:$0xff] %vm733_vm2, %v672_v52  ;;  %v670_v58 = vmax.f32 %v418_v53, 0.0  ;;  %v439_v59 = vadd.f32 %v939_v57, %v1157_v34  ;;  %v971_v60 = vpop.f32.mrf.mxu1 }
  0xdc   : > { %769 = vst.msk [vmem:[%s1165_s25 + $0x118] sm:$0xff] %vm733_vm2, %v704_v55  ;;  %v702_v61 = vmax.f32 %v546_v56, 0.0  ;;  %v567_v62 = vadd.f32 %v971_v60, %v1157_v34  ;;  %v430_v63 = vpop.f32.mrf.mxu0 }
  0xdd   : > { %735 = vst.msk [vmem:[%s1165_s25 + $0x8] sm:$0xff] %vm733_vm2, %v670_v58  ;;  %v675_v0 = vmax.f32 %v439_v59, 0.0  ;;  %v431_v1 = vadd.f32 %v1157_v34, %v430_v63  ;;  %v558_v2 = vpop.f32.mrf.mxu1 }
  0xde   : > { %767 = vst.msk [vmem:[%s1165_s25 + $0x108] sm:$0xff] %vm733_vm2, %v702_v61  ;;  %v707_v3 = vmax.f32 %v567_v62, 0.0  ;;  %v559_v4 = vadd.f32 %v1157_v34, %v558_v2  ;;  %v940_v5 = vpop.f32.mrf.mxu0 }
  0xdf   : > { %740 = vst.msk [vmem:[%s1165_s25 + $0x30] sm:$0xff] %vm733_vm2, %v675_v0  ;;  %v673_v6 = vmax.f32 %v431_v1, 0.0  ;;  %v442_v7 = vadd.f32 %v940_v5, %v1157_v34  ;;  %v972_v8 = vpop.f32.mrf.mxu1 }
  0xe0   : > { %772 = vst.msk [vmem:[%s1165_s25 + $0x130] sm:$0xff] %vm733_vm2, %v707_v3  ;;  %v705_v9 = vmax.f32 %v559_v4, 0.0  ;;  %v570_v10 = vadd.f32 %v972_v8, %v1157_v34  ;;  %v433_v11 = vpop.f32.mrf.mxu0 }
  0xe1   : > { %738 = vst.msk [vmem:[%s1165_s25 + $0x20] sm:$0xff] %vm733_vm2, %v673_v6  ;;  %v676_v12 = vmax.f32 %v442_v7, 0.0  ;;  %v434_v13 = vadd.f32 %v1157_v34, %v433_v11  ;;  %v561_v14 = vpop.f32.mrf.mxu1 }
  0xe2   : > { %770 = vst.msk [vmem:[%s1165_s25 + $0x120] sm:$0xff] %vm733_vm2, %v705_v9  ;;  %v708_v15 = vmax.f32 %v570_v10, 0.0  ;;  %v562_v16 = vadd.f32 %v1157_v34, %v561_v14  ;;  %v943_v17 = vpop.f32.mrf.mxu0 }
  0xe3   : > { %741 = vst.msk [vmem:[%s1165_s25 + $0x38] sm:$0xff] %vm733_vm2, %v676_v12  ;;  %v674_v18 = vmax.f32 %v434_v13, 0.0  ;;  %v455_v19 = vadd.f32 %v943_v17, %v1157_v34  ;;  %v975_v20 = vpop.f32.mrf.mxu1 }
  0xe4   : > { %773 = vst.msk [vmem:[%s1165_s25 + $0x138] sm:$0xff] %vm733_vm2, %v708_v15  ;;  %v706_v21 = vmax.f32 %v562_v16, 0.0  ;;  %v583_v22 = vadd.f32 %v975_v20, %v1157_v34  ;;  %v446_v23 = vpop.f32.mrf.mxu0 }
  0xe5   : > { %739 = vst.msk [vmem:[%s1165_s25 + $0x28] sm:$0xff] %vm733_vm2, %v674_v18  ;;  %v679_v24 = vmax.f32 %v455_v19, 0.0  ;;  %v447_v25 = vadd.f32 %v1157_v34, %v446_v23  ;;  %v574_v26 = vpop.f32.mrf.mxu1 }
  0xe6   : > { %771 = vst.msk [vmem:[%s1165_s25 + $0x128] sm:$0xff] %vm733_vm2, %v706_v21  ;;  %v711_v27 = vmax.f32 %v583_v22, 0.0  ;;  %v575_v28 = vadd.f32 %v1157_v34, %v574_v26  ;;  %v944_v29 = vpop.f32.mrf.mxu0 }
  0xe7   : > { %744 = vst.msk [vmem:[%s1165_s25 + $0x50] sm:$0xff] %vm733_vm2, %v679_v24  ;;  %v677_v30 = vmax.f32 %v447_v25, 0.0  ;;  %v458_v31 = vadd.f32 %v944_v29, %v1157_v34  ;;  %v976_v32 = vpop.f32.mrf.mxu1 }
  0xe8   : > { %776 = vst.msk [vmem:[%s1165_s25 + $0x150] sm:$0xff] %vm733_vm2, %v711_v27  ;;  %v709_v33 = vmax.f32 %v575_v28, 0.0  ;;  %v586_v35 = vadd.f32 %v976_v32, %v1157_v34  ;;  %v449_v36 = vpop.f32.mrf.mxu0 }
  0xe9   : > { %742 = vst.msk [vmem:[%s1165_s25 + $0x40] sm:$0xff] %vm733_vm2, %v677_v30  ;;  %v680_v37 = vmax.f32 %v458_v31, 0.0  ;;  %v450_v38 = vadd.f32 %v1157_v34, %v449_v36  ;;  %v577_v39 = vpop.f32.mrf.mxu1 }
  0xea   : > { %774 = vst.msk [vmem:[%s1165_s25 + $0x140] sm:$0xff] %vm733_vm2, %v709_v33  ;;  %v712_v40 = vmax.f32 %v586_v35, 0.0  ;;  %v578_v41 = vadd.f32 %v1157_v34, %v577_v39  ;;  %v947_v42 = vpop.f32.mrf.mxu0 }
  0xeb   : > { %745 = vst.msk [vmem:[%s1165_s25 + $0x58] sm:$0xff] %vm733_vm2, %v680_v37  ;;  %v678_v43 = vmax.f32 %v450_v38, 0.0  ;;  %v471_v44 = vadd.f32 %v947_v42, %v1157_v34  ;;  %v979_v45 = vpop.f32.mrf.mxu1 }
  0xec   : > { %777 = vst.msk [vmem:[%s1165_s25 + $0x158] sm:$0xff] %vm733_vm2, %v712_v40  ;;  %v710_v46 = vmax.f32 %v578_v41, 0.0  ;;  %v599_v47 = vadd.f32 %v979_v45, %v1157_v34  ;;  %v462_v48 = vpop.f32.mrf.mxu0 }
  0xed   : > { %743 = vst.msk [vmem:[%s1165_s25 + $0x48] sm:$0xff] %vm733_vm2, %v678_v43  ;;  %v683_v49 = vmax.f32 %v471_v44, 0.0  ;;  %v463_v50 = vadd.f32 %v1157_v34, %v462_v48  ;;  %v590_v51 = vpop.f32.mrf.mxu1 }
  0xee   : > { %775 = vst.msk [vmem:[%s1165_s25 + $0x148] sm:$0xff] %vm733_vm2, %v710_v46  ;;  %v715_v52 = vmax.f32 %v599_v47, 0.0  ;;  %v591_v53 = vadd.f32 %v1157_v34, %v590_v51  ;;  %v948_v54 = vpop.f32.mrf.mxu0 }
  0xef   : > { %748 = vst.msk [vmem:[%s1165_s25 + $0x70] sm:$0xff] %vm733_vm2, %v683_v49  ;;  %v681_v55 = vmax.f32 %v463_v50, 0.0  ;;  %v474_v56 = vadd.f32 %v948_v54, %v1157_v34  ;;  %v980_v57 = vpop.f32.mrf.mxu1 }
  0xf0   : > { %780 = vst.msk [vmem:[%s1165_s25 + $0x170] sm:$0xff] %vm733_vm2, %v715_v52  ;;  %v713_v58 = vmax.f32 %v591_v53, 0.0  ;;  %v602_v59 = vadd.f32 %v980_v57, %v1157_v34  ;;  %v465_v60 = vpop.f32.mrf.mxu0 }
  0xf1   : > { %746 = vst.msk [vmem:[%s1165_s25 + $0x60] sm:$0xff] %vm733_vm2, %v681_v55  ;;  %v684_v61 = vmax.f32 %v474_v56, 0.0  ;;  %v466_v62 = vadd.f32 %v1157_v34, %v465_v60  ;;  %v593_v63 = vpop.f32.mrf.mxu1 }
  0xf2   : > { %778 = vst.msk [vmem:[%s1165_s25 + $0x160] sm:$0xff] %vm733_vm2, %v713_v58  ;;  %v716_v0 = vmax.f32 %v602_v59, 0.0  ;;  %v594_v1 = vadd.f32 %v1157_v34, %v593_v63  ;;  %v951_v2 = vpop.f32.mrf.mxu0 }
  0xf3   : > { %749 = vst.msk [vmem:[%s1165_s25 + $0x78] sm:$0xff] %vm733_vm2, %v684_v61  ;;  %v682_v3 = vmax.f32 %v466_v62, 0.0  ;;  %v487_v4 = vadd.f32 %v951_v2, %v1157_v34  ;;  %v983_v5 = vpop.f32.mrf.mxu1 }
  0xf4   : > { %781 = vst.msk [vmem:[%s1165_s25 + $0x178] sm:$0xff] %vm733_vm2, %v716_v0  ;;  %v714_v6 = vmax.f32 %v594_v1, 0.0  ;;  %v615_v7 = vadd.f32 %v983_v5, %v1157_v34  ;;  %v478_v8 = vpop.f32.mrf.mxu0 }
  0xf5   : > { %747 = vst.msk [vmem:[%s1165_s25 + $0x68] sm:$0xff] %vm733_vm2, %v682_v3  ;;  %v687_v9 = vmax.f32 %v487_v4, 0.0  ;;  %v479_v10 = vadd.f32 %v1157_v34, %v478_v8  ;;  %v606_v11 = vpop.f32.mrf.mxu1 }
  0xf6   : > { %779 = vst.msk [vmem:[%s1165_s25 + $0x168] sm:$0xff] %vm733_vm2, %v714_v6  ;;  %v719_v12 = vmax.f32 %v615_v7, 0.0  ;;  %v607_v13 = vadd.f32 %v1157_v34, %v606_v11  ;;  %v952_v14 = vpop.f32.mrf.mxu0 }
  0xf7   : > { %752 = vst.msk [vmem:[%s1165_s25 + $0x90] sm:$0xff] %vm733_vm2, %v687_v9  ;;  %v685_v15 = vmax.f32 %v479_v10, 0.0  ;;  %v490_v16 = vadd.f32 %v952_v14, %v1157_v34  ;;  %v984_v17 = vpop.f32.mrf.mxu1 }
  0xf8   : > { %784 = vst.msk [vmem:[%s1165_s25 + $0x190] sm:$0xff] %vm733_vm2, %v719_v12  ;;  %v717_v18 = vmax.f32 %v607_v13, 0.0  ;;  %v618_v19 = vadd.f32 %v984_v17, %v1157_v34  ;;  %v481_v20 = vpop.f32.mrf.mxu0 }
  0xf9   : > { %750 = vst.msk [vmem:[%s1165_s25 + $0x80] sm:$0xff] %vm733_vm2, %v685_v15  ;;  %v688_v21 = vmax.f32 %v490_v16, 0.0  ;;  %v482_v22 = vadd.f32 %v1157_v34, %v481_v20  ;;  %v609_v23 = vpop.f32.mrf.mxu1 }
  0xfa   : > { %782 = vst.msk [vmem:[%s1165_s25 + $0x180] sm:$0xff] %vm733_vm2, %v717_v18  ;;  %v720_v24 = vmax.f32 %v618_v19, 0.0  ;;  %v610_v25 = vadd.f32 %v1157_v34, %v609_v23  ;;  %v955_v26 = vpop.f32.mrf.mxu0 }
  0xfb   : > { %753 = vst.msk [vmem:[%s1165_s25 + $0x98] sm:$0xff] %vm733_vm2, %v688_v21  ;;  %v686_v27 = vmax.f32 %v482_v22, 0.0  ;;  %v503_v28 = vadd.f32 %v955_v26, %v1157_v34  ;;  %v987_v29 = vpop.f32.mrf.mxu1 }
  0xfc   : > { %785 = vst.msk [vmem:[%s1165_s25 + $0x198] sm:$0xff] %vm733_vm2, %v720_v24  ;;  %v718_v30 = vmax.f32 %v610_v25, 0.0  ;;  %v631_v31 = vadd.f32 %v987_v29, %v1157_v34  ;;  %v494_v32 = vpop.f32.mrf.mxu0 }
  0xfd   : > { %751 = vst.msk [vmem:[%s1165_s25 + $0x88] sm:$0xff] %vm733_vm2, %v686_v27  ;;  %v691_v33 = vmax.f32 %v503_v28, 0.0  ;;  %v495_v35 = vadd.f32 %v1157_v34, %v494_v32  ;;  %v622_v36 = vpop.f32.mrf.mxu1 }
  0xfe   : > { %783 = vst.msk [vmem:[%s1165_s25 + $0x188] sm:$0xff] %vm733_vm2, %v718_v30  ;;  %v723_v37 = vmax.f32 %v631_v31, 0.0  ;;  %v623_v38 = vadd.f32 %v1157_v34, %v622_v36  ;;  %v956_v39 = vpop.f32.mrf.mxu0 }
  0xff   : > { %756 = vst.msk [vmem:[%s1165_s25 + $0xb0] sm:$0xff] %vm733_vm2, %v691_v33  ;;  %v689_v40 = vmax.f32 %v495_v35, 0.0  ;;  %v506_v41 = vadd.f32 %v956_v39, %v1157_v34  ;;  %v988_v42 = vpop.f32.mrf.mxu1 }
 0x100   : > { %788 = vst.msk [vmem:[%s1165_s25 + $0x1b0] sm:$0xff] %vm733_vm2, %v723_v37  ;;  %v721_v43 = vmax.f32 %v623_v38, 0.0  ;;  %v634_v44 = vadd.f32 %v988_v42, %v1157_v34  ;;  %v497_v45 = vpop.f32.mrf.mxu0 }
 0x101   : > { %754 = vst.msk [vmem:[%s1165_s25 + $0xa0] sm:$0xff] %vm733_vm2, %v689_v40  ;;  %v692_v46 = vmax.f32 %v506_v41, 0.0  ;;  %v498_v47 = vadd.f32 %v1157_v34, %v497_v45  ;;  %v625_v48 = vpop.f32.mrf.mxu1 }
 0x102   : > { %786 = vst.msk [vmem:[%s1165_s25 + $0x1a0] sm:$0xff] %vm733_vm2, %v721_v43  ;;  %v724_v49 = vmax.f32 %v634_v44, 0.0  ;;  %v626_v50 = vadd.f32 %v1157_v34, %v625_v48  ;;  %v959_v51 = vpop.f32.mrf.mxu0 }
 0x103   : > { %757 = vst.msk [vmem:[%s1165_s25 + $0xb8] sm:$0xff] %vm733_vm2, %v692_v46  ;;  %v690_v52 = vmax.f32 %v498_v47, 0.0  ;;  %v519_v53 = vadd.f32 %v959_v51, %v1157_v34  ;;  %v991_v54 = vpop.f32.mrf.mxu1 }
 0x104   : > { %789 = vst.msk [vmem:[%s1165_s25 + $0x1b8] sm:$0xff] %vm733_vm2, %v724_v49  ;;  %v722_v55 = vmax.f32 %v626_v50, 0.0  ;;  %v647_v56 = vadd.f32 %v991_v54, %v1157_v34  ;;  %v510_v57 = vpop.f32.mrf.mxu0 }
 0x105   : > { %755 = vst.msk [vmem:[%s1165_s25 + $0xa8] sm:$0xff] %vm733_vm2, %v690_v52  ;;  %v695_v58 = vmax.f32 %v519_v53, 0.0  ;;  %v511_v59 = vadd.f32 %v1157_v34, %v510_v57  ;;  %v638_v60 = vpop.f32.mrf.mxu1 }
 0x106   : > { %787 = vst.msk [vmem:[%s1165_s25 + $0x1a8] sm:$0xff] %vm733_vm2, %v722_v55  ;;  %v727_v61 = vmax.f32 %v647_v56, 0.0  ;;  %v639_v62 = vadd.f32 %v1157_v34, %v638_v60  ;;  %v960_v63 = vpop.f32.mrf.mxu0 }
 0x107   : > { %760 = vst.msk [vmem:[%s1165_s25 + $0xd0] sm:$0xff] %vm733_vm2, %v695_v58  ;;  %v693_v0 = vmax.f32 %v511_v59, 0.0  ;;  %v522_v1 = vadd.f32 %v960_v63, %v1157_v34  ;;  %v992_v2 = vpop.f32.mrf.mxu1 }
 0x108   : > { %792 = vst.msk [vmem:[%s1165_s25 + $0x1d0] sm:$0xff] %vm733_vm2, %v727_v61  ;;  %v725_v3 = vmax.f32 %v639_v62, 0.0  ;;  %v650_v4 = vadd.f32 %v992_v2, %v1157_v34  ;;  %v513_v5 = vpop.f32.mrf.mxu0 }
 0x109   : > { %758 = vst.msk [vmem:[%s1165_s25 + $0xc0] sm:$0xff] %vm733_vm2, %v693_v0  ;;  %v696_v6 = vmax.f32 %v522_v1, 0.0  ;;  %v514_v7 = vadd.f32 %v1157_v34, %v513_v5  ;;  %v641_v8 = vpop.f32.mrf.mxu1 }
 0x10a   : > { %790 = vst.msk [vmem:[%s1165_s25 + $0x1c0] sm:$0xff] %vm733_vm2, %v725_v3  ;;  %v728_v9 = vmax.f32 %v650_v4, 0.0  ;;  %v642_v10 = vadd.f32 %v1157_v34, %v641_v8  ;;  %v963_v11 = vpop.f32.mrf.mxu0 }
 0x10b   : > { %761 = vst.msk [vmem:[%s1165_s25 + $0xd8] sm:$0xff] %vm733_vm2, %v696_v6  ;;  %v694_v12 = vmax.f32 %v514_v7, 0.0  ;;  %v535_v13 = vadd.f32 %v963_v11, %v1157_v34  ;;  %v995_v14 = vpop.f32.mrf.mxu1 }
 0x10c   : > { %793 = vst.msk [vmem:[%s1165_s25 + $0x1d8] sm:$0xff] %vm733_vm2, %v728_v9  ;;  %v726_v15 = vmax.f32 %v642_v10, 0.0  ;;  %v663_v16 = vadd.f32 %v995_v14, %v1157_v34  ;;  %v526_v17 = vpop.f32.mrf.mxu0 }
 0x10d   : > { %759 = vst.msk [vmem:[%s1165_s25 + $0xc8] sm:$0xff] %vm733_vm2, %v694_v12  ;;  %v699_v18 = vmax.f32 %v535_v13, 0.0  ;;  %v527_v19 = vadd.f32 %v1157_v34, %v526_v17  ;;  %v654_v20 = vpop.f32.mrf.mxu1 }
 0x10e   : > { %791 = vst.msk [vmem:[%s1165_s25 + $0x1c8] sm:$0xff] %vm733_vm2, %v726_v15  ;;  %v731_v21 = vmax.f32 %v663_v16, 0.0  ;;  %v655_v22 = vadd.f32 %v1157_v34, %v654_v20  ;;  %v964_v23 = vpop.f32.mrf.mxu0 }
 0x10f   : > { %764 = vst.msk [vmem:[%s1165_s25 + $0xf0] sm:$0xff] %vm733_vm2, %v699_v18  ;;  %v697_v24 = vmax.f32 %v527_v19, 0.0  ;;  %v538_v25 = vadd.f32 %v964_v23, %v1157_v34  ;;  %v996_v26 = vpop.f32.mrf.mxu1 }
 0x110   : > { %796 = vst.msk [vmem:[%s1165_s25 + $0x1f0] sm:$0xff] %vm733_vm2, %v731_v21  ;;  %v729_v27 = vmax.f32 %v655_v22, 0.0  ;;  %v666_v28 = vadd.f32 %v996_v26, %v1157_v34  ;;  %v529_v29 = vpop.f32.mrf.mxu0 }
 0x111   : > { %762 = vst.msk [vmem:[%s1165_s25 + $0xe0] sm:$0xff] %vm733_vm2, %v697_v24  ;;  %v700_v30 = vmax.f32 %v538_v25, 0.0  ;;  %v530_v31 = vadd.f32 %v1157_v34, %v529_v29  ;;  %v657_v32 = vpop.f32.mrf.mxu1 }
 0x112   : > { %794 = vst.msk [vmem:[%s1165_s25 + $0x1e0] sm:$0xff] %vm733_vm2, %v729_v27  ;;  %v732_v33 = vmax.f32 %v666_v28, 0.0  ;;  %v658_v35 = vadd.f32 %v1157_v34, %v657_v32 }
 0x113   : > { %765 = vst.msk [vmem:[%s1165_s25 + $0xf8] sm:$0xff] %vm733_vm2, %v700_v30  ;;  %v698_v36 = vmax.f32 %v530_v31, 0.0 }
 0x114   : > { %797 = vst.msk [vmem:[%s1165_s25 + $0x1f8] sm:$0xff] %vm733_vm2, %v732_v33  ;;  %v730_v37 = vmax.f32 %v658_v35, 0.0 }
 0x115   : > { %763 = vst.msk [vmem:[%s1165_s25 + $0xe8] sm:$0xff] %vm733_vm2, %v698_v36 }
 0x116   : > { %795 = vst.msk [vmem:[%s1165_s25 + $0x1e8] sm:$0xff] %vm733_vm2, %v730_v37 }
 0x117 PF: > { %s13_s12 = sadd.s32 1, %s1015_s12  }
 0x118   : > { %p10_p4 = scmp.ge.s32.totalorder %s13_s12, 6  }
 0x11a   :  { %12 = sbr.rel (!%p10_p4) target bundleno = 1 (0x1), region = 62 }

</bundles_post_ra>
